<compile_context>
chip_gen: v7x
topology: tpu7x:2x2x1
jax: 0.10.0
libtpu: 0.0.40
codegen_flags: <defaults>
</compile_context>

<pallas_src>
from functools import partial

import jax
import jax.numpy as jnp
from jax.experimental import pallas as pl
from jax.experimental.pallas import tpu as pltpu


def _round_up(x, m):
    return (x + m - 1) // m * m


# --------------------------------------------------------------------------- #
# Kernels
# --------------------------------------------------------------------------- #
def conv_stats_kernel(x_ref, w1_ref, b1_ref, ssum_ref, ssq_ref, *, mxu_dtype):
    """Pass A: y = W1 @ x + b1 for one (Cin, TM) tile; accumulate per-channel
    sum / sumsq into resident (Cmid, 1) outputs.  y is never written to HBM."""
    @pl.when(pl.program_id(0) == 0)
    def _init():
        ssum_ref[...] = jnp.zeros_like(ssum_ref)
        ssq_ref[...] = jnp.zeros_like(ssq_ref)

    y = jnp.dot(w1_ref[...].astype(mxu_dtype), x_ref[...].astype(mxu_dtype),
                preferred_element_type=jnp.float32) + b1_ref[...]
    ssum_ref[...] += jnp.sum(y, axis=1, keepdims=True)
    ssq_ref[...] += jnp.sum(y * y, axis=1, keepdims=True)


def fused_mlp_kernel(x_ref, w1_ref, b1_ref, scale_ref, shift_ref, w2_ref, b2_ref,
                     o_ref, *, mxu_dtype, add_residual):
    """Pass B: o = W2 @ relu((W1 @ x + b1) * scale + shift) + b2 [+ x],
    one (Cin, TM) tile in, one (Cout, TM) tile out."""
    x = x_ref[...]
    y = jnp.dot(w1_ref[...].astype(mxu_dtype), x.astype(mxu_dtype),
                preferred_element_type=jnp.float32) + b1_ref[...]
    h = jnp.maximum(y * scale_ref[...] + shift_ref[...], 0.0)
    o = jnp.dot(w2_ref[...].astype(mxu_dtype), h.astype(mxu_dtype),
                preferred_element_type=jnp.float32) + b2_ref[...]
    if add_residual:
        o = o + x
    o_ref[...] = o


# --------------------------------------------------------------------------- #
# One Conv1x1 -> BatchNorm2d(train) -> ReLU -> Conv1x1 [+ input residual] block
# on a channel-major slab x: (Cin, M).
# --------------------------------------------------------------------------- #
def _mlp_block(x, p, *, add_residual, tile_m, mxu_dtype, bn_eps=1e-5):
    cin, m = x.shape
    cmid = p["w1"].shape[0]
    cout = p["w2"].shape[0]

    tm = min(tile_m, _round_up(m, 128))       # lane-dense tile (multiple of 128)
    m_pad = _round_up(m, tm)
    n_pad = m_pad - m
    n_blocks = m_pad // tm

    xp = jnp.pad(x, ((0, 0), (0, n_pad))) if n_pad else x

    # ---- pass A: per-channel batch statistics of conv1 output ------------- #
    ssum, ssq = pl.pallas_call(
        partial(conv_stats_kernel, mxu_dtype=mxu_dtype),
        grid=(n_blocks,),
        in_specs=[
            pl.BlockSpec((cin, tm), lambda i: (0, i)),
            pl.BlockSpec((cmid, cin), lambda i: (0, 0)),
            pl.BlockSpec((cmid, 1), lambda i: (0, 0)),
        ],
        out_specs=(
            pl.BlockSpec((cmid, 1), lambda i: (0, 0)),
            pl.BlockSpec((cmid, 1), lambda i: (0, 0)),
        ),
        out_shape=(
            jax.ShapeDtypeStruct((cmid, 1), jnp.float32),
            jax.ShapeDtypeStruct((cmid, 1), jnp.float32),
        ),
        compiler_params=pltpu.CompilerParams(dimension_semantics=("arbitrary",)),
    )(xp, p["w1"], p["b1"])

    # ---- fold training-mode BatchNorm into one scale/shift (O(C) math) ---- #
    # Padded columns of xp are zero, so their conv1 output is exactly b1;
    # remove their contribution from the accumulated statistics exactly.
    cnt = jnp.float32(m)
    s1 = ssum - n_pad * p["b1"]
    s2 = ssq - n_pad * (p["b1"] * p["b1"])
    mean = s1 / cnt
    var = jnp.maximum(s2 / cnt - mean * mean, 0.0)   # biased variance (torch BN train)
    inv_std = jax.lax.rsqrt(var + bn_eps)
    scale = p["gamma"] * inv_std                     # (Cmid, 1)
    shift = p["beta"] - mean * scale                 # (Cmid, 1)

    # ---- pass B: fused conv1 + BN + ReLU + conv2 (+ residual) -------------- #
    out = pl.pallas_call(
        partial(fused_mlp_kernel, mxu_dtype=mxu_dtype, add_residual=add_residual),
        grid=(n_blocks,),
        in_specs=[
            pl.BlockSpec((cin, tm), lambda i: (0, i)),
            pl.BlockSpec((cmid, cin), lambda i: (0, 0)),
            pl.BlockSpec((cmid, 1), lambda i: (0, 0)),
            pl.BlockSpec((cmid, 1), lambda i: (0, 0)),
            pl.BlockSpec((cmid, 1), lambda i: (0, 0)),
            pl.BlockSpec((cout, cmid), lambda i: (0, 0)),
            pl.BlockSpec((cout, 1), lambda i: (0, 0)),
        ],
        out_specs=pl.BlockSpec((cout, tm), lambda i: (0, i)),
        out_shape=jax.ShapeDtypeStruct((cout, m_pad), jnp.float32),
        compiler_params=pltpu.CompilerParams(dimension_semantics=("parallel",)),
    )(xp, p["w1"], p["b1"], scale, shift, p["w2"], p["b2"])

    return out[:, :m] if n_pad else out


# --------------------------------------------------------------------------- #
# Full CoComplementation forward
# --------------------------------------------------------------------------- #
@partial(jax.jit, static_argnames=("tile_m", "mxu_dtype"))
def co_complementation_forward(feats, knn_feats, params, *, tile_m=1024,
                               mxu_dtype=jnp.bfloat16):
    b, c, n_pts, one = feats.shape
    k = knn_feats.shape[3]
    assert one == 1 and k == c, "CoComplementation requires feats[...,1] and K == channels"

    feats = feats.astype(jnp.float32)
    knn_feats = knn_feats.astype(jnp.float32)

    # diff == feats.repeat(1,1,1,K) - knn_feats (broadcast over the size-1 last dim)
    diff = feats - knn_feats                                            # (B, C, Np, K)

    # stage 1 (mlp_feats): channels = C, lane axis = B*Np*K
    x1 = jnp.transpose(diff, (1, 0, 2, 3)).reshape(c, b * n_pts * k)    # (C, M1)
    y1 = _mlp_block(x1, params["feats"], add_residual=True,
                    tile_m=tile_m, mxu_dtype=mxu_dtype)                 # (C, M1)

    # transpose(1, 3): channel axis becomes K; relayout once in the wrapper
    t1 = jnp.transpose(y1.reshape(c, b, n_pts, k), (3, 1, 2, 0)).reshape(k, b * n_pts * c)
    y2 = _mlp_block(t1, params["spatial"], add_residual=True,
                    tile_m=tile_m, mxu_dtype=mxu_dtype)                 # (K, M2)

    # stage 3 (mlp_loc): Conv C->C, BN, ReLU, Conv C->1, no residual
    y3 = _mlp_block(y2, params["loc"], add_residual=False,
                    tile_m=tile_m, mxu_dtype=mxu_dtype)                 # (1, M2)

    # (1, B, Np, C) -> final transpose(1, 3) of torch's (B, 1, Np, C) -> (B, C, Np, 1)
    return jnp.transpose(y3.reshape(1, b, n_pts, c), (1, 3, 2, 0))


# --------------------------------------------------------------------------- #
# Pure-JAX reference (mirrors the PyTorch module, training-mode BatchNorm)
# --------------------------------------------------------------------------- #
def _conv1x1_ref(x, w, bias):
    y = jnp.einsum("oc,bchw->bohw", w, x, precision=jax.lax.Precision.HIGHEST)
    return y + bias[None, :, None, None]


def _bn_train_ref(x, gamma, beta, eps=1e-5):
    mu = jnp.mean(x, axis=(0, 2, 3), keepdims=True)
    var = jnp.mean(jnp.square(x - mu), axis=(0, 2, 3), keepdims=True)
    return (x - mu) / jnp.sqrt(var + eps) * gamma[None, :, None, None] \
        + beta[None, :, None, None]


def _mlp_ref(x, p):
    h = _conv1x1_ref(x, p["w1"], p["b1"][:, 0])
    h = _bn_train_ref(h, p["gamma"][:, 0], p["beta"][:, 0])
    h = jnp.maximum(h, 0.0)
    return _conv1x1_ref(h, p["w2"], p["b2"][:, 0])


def co_complementation_reference(feats, knn_feats, params):
    k = knn_feats.shape[3]
    diff = jnp.tile(feats, (1, 1, 1, k)) - knn_feats
    out1 = _mlp_ref(diff, params["feats"]) + diff
    out1t = jnp.transpose(out1, (0, 3, 2, 1))
    out2 = _mlp_ref(out1t, params["spatial"]) + out1t
    loc = _mlp_ref(out2, params["loc"])
    return jnp.transpose(loc, (0, 3, 2, 1))


# --------------------------------------------------------------------------- #
# Params & demo
# --------------------------------------------------------------------------- #
def _init_block(key, cin, cmid, cout):
    ks = jax.random.split(key, 6)
    s1 = 1.0 / (cin ** 0.5)
    s2 = 1.0 / (cmid ** 0.5)
    return {
        "w1": jax.random.uniform(ks[0], (cmid, cin), jnp.float32, -s1, s1),
        "b1": jax.random.uniform(ks[1], (cmid, 1), jnp.float32, -s1, s1),
        "gamma": 1.0 + 0.1 * jax.random.normal(ks[2], (cmid, 1), jnp.float32),
        "beta": 0.1 * jax.random.normal(ks[3], (cmid, 1), jnp.float32),
        "w2": jax.random.uniform(ks[4], (cout, cmid), jnp.float32, -s2, s2),
        "b2": jax.random.uniform(ks[5], (cout, 1), jnp.float32, -s2, s2),
    }


def init_params(key, channels):
    kf, ks_, kl = jax.random.split(key, 3)
    c = channels
    return {
        "feats": _init_block(kf, c, c, c),
        "spatial": _init_block(ks_, c, c, c),
        "loc": _init_block(kl, c, c, 1),
    }


def _rel_err(a, b):
    a = a.astype(jnp.float32).ravel()
    b = b.astype(jnp.float32).ravel()
    return jnp.sqrt(jnp.sum((a - b) ** 2)) / (jnp.sqrt(jnp.sum(b ** 2)) + 1e-12)


if __name__ == "__main__":
    key = jax.random.PRNGKey(0)
    k_f, k_k, k_p = jax.random.split(key, 3)

    # Small demo shapes.  K must equal channels; Np=100 exercises the grid
    # (M = B*Np*K = 1600 -> padded to 2048, two tiles of 1024) and the exact
    # pad-correction path for the BatchNorm statistics.
    B, C, NP = 2, 8, 100
    K = C
    feats = jax.random.normal(k_f, (B, C, NP, 1), jnp.float32)
    knn_feats = jax.random.normal(k_k, (B, C, NP, K), jnp.float32)
    params = init_params(k_p, C)

    ref = co_complementation_reference(feats, knn_feats, params)

    # Bit-faithful path (f32 MXU operands): tight check vs the pure-JAX reference.
    out_f32 = jax.block_until_ready(
        co_complementation_forward(feats, knn_feats, params, mxu_dtype=jnp.float32))
    assert out_f32.shape == (B, C, NP, 1)
    assert float(_rel_err(out_f32, ref)) < 1e-2, "f32 kernel mismatch vs reference"

    # Fast path (bf16 MXU operands, f32 accumulation): looser tolerance.
    out_bf16 = jax.block_until_ready(
        co_complementation_forward(feats, knn_feats, params, mxu_dtype=jnp.bfloat16))
    assert out_bf16.shape == (B, C, NP, 1)
    assert float(_rel_err(out_bf16, ref)) < 1e-1, "bf16 kernel mismatch vs reference"

    print("KERNEL_OK")
</pallas_src>

<mosaic_0001>
module attributes {stable_mosaic.version = 11 : i64} {
  func.func @conv_stats_kernel(%arg0: i32, %arg1: memref<8x1024xf32, #tpu.memory_space<vmem>>, %arg2: memref<8x8xf32, #tpu.memory_space<vmem>>, %arg3: memref<8x1xf32, #tpu.memory_space<vmem>>, %arg4: memref<8x1xf32, #tpu.memory_space<vmem>>, %arg5: memref<8x1xf32, #tpu.memory_space<vmem>>) attributes {dimension_semantics = [#tpu.dimension_semantics<arbitrary>], iteration_bounds = array<i64: 2>, scalar_prefetch = 0 : i64, scratch_operands = 0 : i64, tpu.core_type = #tpu.core_type<tc>, window_params = [{transform_indices = @transform_0, window_bounds = array<i64: 8, 1024>}, {pipeline_mode = #tpu.pipeline_mode<synchronous>, transform_indices = @transform_1, window_bounds = array<i64: 8, 8>}, {pipeline_mode = #tpu.pipeline_mode<synchronous>, transform_indices = @transform_2, window_bounds = array<i64: 8, 1>}, {pipeline_mode = #tpu.pipeline_mode<synchronous>, transform_indices = @transform_3, window_bounds = array<i64: 8, 1>}, {pipeline_mode = #tpu.pipeline_mode<synchronous>, transform_indices = @transform_4, window_bounds = array<i64: 8, 1>}]} {
    %c0_i32 = arith.constant 0 : i32
    %0 = arith.cmpi eq, %arg0, %c0_i32 : i32
    %1 = arith.extui %0 : i1 to i32
    %c0_i32_0 = arith.constant 0 : i32
    %2 = arith.cmpi ne, %1, %c0_i32_0 : i32
    scf.if %2 {
      %cst_16 = arith.constant 0.000000e+00 : f32
      %20 = vector.broadcast %cst_16 : f32 to vector<8x1xf32>
      %c0_17 = arith.constant 0 : index
      %c0_18 = arith.constant 0 : index
      %21 = vector.load %arg4[%c0_17, %c0_18] : memref<8x1xf32, #tpu.memory_space<vmem>>, vector<8x1xf32>
      tpu.vector_store %arg4[%c0_17, %c0_18], %20 {strides = array<i32>} : memref<8x1xf32, #tpu.memory_space<vmem>>, vector<8x1xf32>,
      %cst_19 = arith.constant 0.000000e+00 : f32
      %22 = vector.broadcast %cst_19 : f32 to vector<8x1xf32>
      %c0_20 = arith.constant 0 : index
      %c0_21 = arith.constant 0 : index
      %23 = vector.load %arg5[%c0_20, %c0_21] : memref<8x1xf32, #tpu.memory_space<vmem>>, vector<8x1xf32>
      tpu.vector_store %arg5[%c0_20, %c0_21], %22 {strides = array<i32>} : memref<8x1xf32, #tpu.memory_space<vmem>>, vector<8x1xf32>,
    } else {
    }
    %c0 = arith.constant 0 : index
    %c0_1 = arith.constant 0 : index
    %3 = vector.load %arg2[%c0, %c0_1] : memref<8x8xf32, #tpu.memory_space<vmem>>, vector<8x8xf32>
    %c0_2 = arith.constant 0 : index
    %c0_3 = arith.constant 0 : index
    %4 = vector.load %arg1[%c0_2, %c0_3] : memref<8x1024xf32, #tpu.memory_space<vmem>>, vector<8x1024xf32>
    %cst = arith.constant dense<0.000000e+00> : vector<8x1024xf32>
    %5 = tpu.matmul %3, %4, %cst {dimension_numbers = #tpu.dot_dimension_numbers<[1], [0], [0], [1], [0, 0, 1, 1], [], []>} : vector<8x8xf32>, vector<8x1024xf32>, vector<8x1024xf32> -> vector<8x1024xf32>
    %c0_4 = arith.constant 0 : index
    %c0_5 = arith.constant 0 : index
    %6 = vector.load %arg3[%c0_4, %c0_5] : memref<8x1xf32, #tpu.memory_space<vmem>>, vector<8x1xf32>
    %7 = vector.broadcast %6 : vector<8x1xf32> to vector<8x1024xf32>
    %8 = arith.addf %5, %7 : vector<8x1024xf32>
    %c0_6 = arith.constant 0 : index
    %c0_7 = arith.constant 0 : index
    %9 = vector.load %arg4[%c0_6, %c0_7] : memref<8x1xf32, #tpu.memory_space<vmem>>, vector<8x1xf32>
    %cst_8 = arith.constant dense<0.000000e+00> : vector<8xf32>
    %10 = vector.multi_reduction <add>, %8, %cst_8 [1] : vector<8x1024xf32> to vector<8xf32>
    %11 = vector.shape_cast %10 : vector<8xf32> to vector<8x1xf32>
    %12 = arith.addf %9, %11 : vector<8x1xf32>
    %c0_9 = arith.constant 0 : index
    %c0_10 = arith.constant 0 : index
    %13 = vector.load %arg4[%c0_9, %c0_10] : memref<8x1xf32, #tpu.memory_space<vmem>>, vector<8x1xf32>
    tpu.vector_store %arg4[%c0_9, %c0_10], %12 {strides = array<i32>} : memref<8x1xf32, #tpu.memory_space<vmem>>, vector<8x1xf32>,
    %c0_11 = arith.constant 0 : index
    %c0_12 = arith.constant 0 : index
    %14 = vector.load %arg5[%c0_11, %c0_12] : memref<8x1xf32, #tpu.memory_space<vmem>>, vector<8x1xf32>
    %15 = arith.mulf %8, %8 : vector<8x1024xf32>
    %cst_13 = arith.constant dense<0.000000e+00> : vector<8xf32>
    %16 = vector.multi_reduction <add>, %15, %cst_13 [1] : vector<8x1024xf32> to vector<8xf32>
    %17 = vector.shape_cast %16 : vector<8xf32> to vector<8x1xf32>
    %18 = arith.addf %14, %17 : vector<8x1xf32>
    %c0_14 = arith.constant 0 : index
    %c0_15 = arith.constant 0 : index
    %19 = vector.load %arg5[%c0_14, %c0_15] : memref<8x1xf32, #tpu.memory_space<vmem>>, vector<8x1xf32>
    tpu.vector_store %arg5[%c0_14, %c0_15], %18 {strides = array<i32>} : memref<8x1xf32, #tpu.memory_space<vmem>>, vector<8x1xf32>,
    return
  }
  func.func @transform_0(%arg0: i32) -> (i32, i32) {
    %c0_i32 = arith.constant 0 : i32
    %c0_i32_0 = arith.constant 0 : i32
    return %c0_i32, %arg0 : i32, i32
  }
  func.func @transform_1(%arg0: i32) -> (i32, i32) {
    %c0_i32 = arith.constant 0 : i32
    %c0_i32_0 = arith.constant 0 : i32
    %c0_i32_1 = arith.constant 0 : i32
    return %c0_i32, %c0_i32_0 : i32, i32
  }
  func.func @transform_2(%arg0: i32) -> (i32, i32) {
    %c0_i32 = arith.constant 0 : i32
    %c0_i32_0 = arith.constant 0 : i32
    %c0_i32_1 = arith.constant 0 : i32
    return %c0_i32, %c0_i32_0 : i32, i32
  }
  func.func @transform_3(%arg0: i32) -> (i32, i32) {
    %c0_i32 = arith.constant 0 : i32
    %c0_i32_0 = arith.constant 0 : i32
    %c0_i32_1 = arith.constant 0 : i32
    return %c0_i32, %c0_i32_0 : i32, i32
  }
  func.func @transform_4(%arg0: i32) -> (i32, i32) {
    %c0_i32 = arith.constant 0 : i32
    %c0_i32_0 = arith.constant 0 : i32
    %c0_i32_1 = arith.constant 0 : i32
    return %c0_i32, %c0_i32_0 : i32, i32
  }
}

module attributes {stable_mosaic.version = 11 : i64} {
  func.func @fused_mlp_kernel(%arg0: i32, %arg1: memref<8x1024xf32, #tpu.memory_space<vmem>>, %arg2: memref<8x8xf32, #tpu.memory_space<vmem>>, %arg3: memref<8x1xf32, #tpu.memory_space<vmem>>, %arg4: memref<8x1xf32, #tpu.memory_space<vmem>>, %arg5: memref<8x1xf32, #tpu.memory_space<vmem>>, %arg6: memref<8x8xf32, #tpu.memory_space<vmem>>, %arg7: memref<8x1xf32, #tpu.memory_space<vmem>>, %arg8: memref<8x1024xf32, #tpu.memory_space<vmem>>) attributes {dimension_semantics = [#tpu.dimension_semantics<parallel>], iteration_bounds = array<i64: 2>, scalar_prefetch = 0 : i64, scratch_operands = 0 : i64, tpu.core_type = #tpu.core_type<tc>, window_params = [{transform_indices = @transform_0, window_bounds = array<i64: 8, 1024>}, {pipeline_mode = #tpu.pipeline_mode<synchronous>, transform_indices = @transform_1, window_bounds = array<i64: 8, 8>}, {pipeline_mode = #tpu.pipeline_mode<synchronous>, transform_indices = @transform_2, window_bounds = array<i64: 8, 1>}, {pipeline_mode = #tpu.pipeline_mode<synchronous>, transform_indices = @transform_3, window_bounds = array<i64: 8, 1>}, {pipeline_mode = #tpu.pipeline_mode<synchronous>, transform_indices = @transform_4, window_bounds = array<i64: 8, 1>}, {pipeline_mode = #tpu.pipeline_mode<synchronous>, transform_indices = @transform_5, window_bounds = array<i64: 8, 8>}, {pipeline_mode = #tpu.pipeline_mode<synchronous>, transform_indices = @transform_6, window_bounds = array<i64: 8, 1>}, {transform_indices = @transform_7, window_bounds = array<i64: 8, 1024>}]} {
    %c0 = arith.constant 0 : index
    %c0_0 = arith.constant 0 : index
    %0 = vector.load %arg1[%c0, %c0_0] : memref<8x1024xf32, #tpu.memory_space<vmem>>, vector<8x1024xf32>
    %c0_1 = arith.constant 0 : index
    %c0_2 = arith.constant 0 : index
    %1 = vector.load %arg2[%c0_1, %c0_2] : memref<8x8xf32, #tpu.memory_space<vmem>>, vector<8x8xf32>
    %cst = arith.constant dense<0.000000e+00> : vector<8x1024xf32>
    %2 = tpu.matmul %1, %0, %cst {dimension_numbers = #tpu.dot_dimension_numbers<[1], [0], [0], [1], [0, 0, 1, 1], [], []>} : vector<8x8xf32>, vector<8x1024xf32>, vector<8x1024xf32> -> vector<8x1024xf32>
    %c0_3 = arith.constant 0 : index
    %c0_4 = arith.constant 0 : index
    %3 = vector.load %arg3[%c0_3, %c0_4] : memref<8x1xf32, #tpu.memory_space<vmem>>, vector<8x1xf32>
    %4 = vector.broadcast %3 : vector<8x1xf32> to vector<8x1024xf32>
    %5 = arith.addf %2, %4 : vector<8x1024xf32>
    %c0_5 = arith.constant 0 : index
    %c0_6 = arith.constant 0 : index
    %6 = vector.load %arg4[%c0_5, %c0_6] : memref<8x1xf32, #tpu.memory_space<vmem>>, vector<8x1xf32>
    %7 = vector.broadcast %6 : vector<8x1xf32> to vector<8x1024xf32>
    %8 = arith.mulf %5, %7 : vector<8x1024xf32>
    %c0_7 = arith.constant 0 : index
    %c0_8 = arith.constant 0 : index
    %9 = vector.load %arg5[%c0_7, %c0_8] : memref<8x1xf32, #tpu.memory_space<vmem>>, vector<8x1xf32>
    %10 = vector.broadcast %9 : vector<8x1xf32> to vector<8x1024xf32>
    %11 = arith.addf %8, %10 : vector<8x1024xf32>
    %cst_9 = arith.constant 0.000000e+00 : f32
    %12 = vector.broadcast %cst_9 : f32 to vector<8x1024xf32>
    %13 = arith.maximumf %11, %12 : vector<8x1024xf32>
    %c0_10 = arith.constant 0 : index
    %c0_11 = arith.constant 0 : index
    %14 = vector.load %arg6[%c0_10, %c0_11] : memref<8x8xf32, #tpu.memory_space<vmem>>, vector<8x8xf32>
    %cst_12 = arith.constant dense<0.000000e+00> : vector<8x1024xf32>
    %15 = tpu.matmul %14, %13, %cst_12 {dimension_numbers = #tpu.dot_dimension_numbers<[1], [0], [0], [1], [0, 0, 1, 1], [], []>} : vector<8x8xf32>, vector<8x1024xf32>, vector<8x1024xf32> -> vector<8x1024xf32>
    %c0_13 = arith.constant 0 : index
    %c0_14 = arith.constant 0 : index
    %16 = vector.load %arg7[%c0_13, %c0_14] : memref<8x1xf32, #tpu.memory_space<vmem>>, vector<8x1xf32>
    %17 = vector.broadcast %16 : vector<8x1xf32> to vector<8x1024xf32>
    %18 = arith.addf %15, %17 : vector<8x1024xf32>
    %19 = arith.addf %18, %0 : vector<8x1024xf32>
    %c0_15 = arith.constant 0 : index
    %c0_16 = arith.constant 0 : index
    %20 = vector.load %arg8[%c0_15, %c0_16] : memref<8x1024xf32, #tpu.memory_space<vmem>>, vector<8x1024xf32>
    tpu.vector_store %arg8[%c0_15, %c0_16], %19 {strides = array<i32>} : memref<8x1024xf32, #tpu.memory_space<vmem>>, vector<8x1024xf32>,
    return
  }
  func.func @transform_0(%arg0: i32) -> (i32, i32) {
    %c0_i32 = arith.constant 0 : i32
    %c0_i32_0 = arith.constant 0 : i32
    return %c0_i32, %arg0 : i32, i32
  }
  func.func @transform_1(%arg0: i32) -> (i32, i32) {
    %c0_i32 = arith.constant 0 : i32
    %c0_i32_0 = arith.constant 0 : i32
    %c0_i32_1 = arith.constant 0 : i32
    return %c0_i32, %c0_i32_0 : i32, i32
  }
  func.func @transform_2(%arg0: i32) -> (i32, i32) {
    %c0_i32 = arith.constant 0 : i32
    %c0_i32_0 = arith.constant 0 : i32
    %c0_i32_1 = arith.constant 0 : i32
    return %c0_i32, %c0_i32_0 : i32, i32
  }
  func.func @transform_3(%arg0: i32) -> (i32, i32) {
    %c0_i32 = arith.constant 0 : i32
    %c0_i32_0 = arith.constant 0 : i32
    %c0_i32_1 = arith.constant 0 : i32
    return %c0_i32, %c0_i32_0 : i32, i32
  }
  func.func @transform_4(%arg0: i32) -> (i32, i32) {
    %c0_i32 = arith.constant 0 : i32
    %c0_i32_0 = arith.constant 0 : i32
    %c0_i32_1 = arith.constant 0 : i32
    return %c0_i32, %c0_i32_0 : i32, i32
  }
  func.func @transform_5(%arg0: i32) -> (i32, i32) {
    %c0_i32 = arith.constant 0 : i32
    %c0_i32_0 = arith.constant 0 : i32
    %c0_i32_1 = arith.constant 0 : i32
    return %c0_i32, %c0_i32_0 : i32, i32
  }
  func.func @transform_6(%arg0: i32) -> (i32, i32) {
    %c0_i32 = arith.constant 0 : i32
    %c0_i32_0 = arith.constant 0 : i32
    %c0_i32_1 = arith.constant 0 : i32
    return %c0_i32, %c0_i32_0 : i32, i32
  }
  func.func @transform_7(%arg0: i32) -> (i32, i32) {
    %c0_i32 = arith.constant 0 : i32
    %c0_i32_0 = arith.constant 0 : i32
    return %c0_i32, %arg0 : i32, i32
  }
}

module attributes {stable_mosaic.version = 11 : i64} {
  func.func @fused_mlp_kernel(%arg0: i32, %arg1: memref<8x1024xf32, #tpu.memory_space<vmem>>, %arg2: memref<8x8xf32, #tpu.memory_space<vmem>>, %arg3: memref<8x1xf32, #tpu.memory_space<vmem>>, %arg4: memref<8x1xf32, #tpu.memory_space<vmem>>, %arg5: memref<8x1xf32, #tpu.memory_space<vmem>>, %arg6: memref<1x8xf32, #tpu.memory_space<vmem>>, %arg7: memref<1x1xf32, #tpu.memory_space<vmem>>, %arg8: memref<1x1024xf32, #tpu.memory_space<vmem>>) attributes {dimension_semantics = [#tpu.dimension_semantics<parallel>], iteration_bounds = array<i64: 2>, scalar_prefetch = 0 : i64, scratch_operands = 0 : i64, tpu.core_type = #tpu.core_type<tc>, window_params = [{transform_indices = @transform_0, window_bounds = array<i64: 8, 1024>}, {pipeline_mode = #tpu.pipeline_mode<synchronous>, transform_indices = @transform_1, window_bounds = array<i64: 8, 8>}, {pipeline_mode = #tpu.pipeline_mode<synchronous>, transform_indices = @transform_2, window_bounds = array<i64: 8, 1>}, {pipeline_mode = #tpu.pipeline_mode<synchronous>, transform_indices = @transform_3, window_bounds = array<i64: 8, 1>}, {pipeline_mode = #tpu.pipeline_mode<synchronous>, transform_indices = @transform_4, window_bounds = array<i64: 8, 1>}, {pipeline_mode = #tpu.pipeline_mode<synchronous>, transform_indices = @transform_5, window_bounds = array<i64: 1, 8>}, {pipeline_mode = #tpu.pipeline_mode<synchronous>, transform_indices = @transform_6, window_bounds = array<i64: 1, 1>}, {transform_indices = @transform_7, window_bounds = array<i64: 1, 1024>}]} {
    %c0 = arith.constant 0 : index
    %c0_0 = arith.constant 0 : index
    %0 = vector.load %arg1[%c0, %c0_0] : memref<8x1024xf32, #tpu.memory_space<vmem>>, vector<8x1024xf32>
    %c0_1 = arith.constant 0 : index
    %c0_2 = arith.constant 0 : index
    %1 = vector.load %arg2[%c0_1, %c0_2] : memref<8x8xf32, #tpu.memory_space<vmem>>, vector<8x8xf32>
    %cst = arith.constant dense<0.000000e+00> : vector<8x1024xf32>
    %2 = tpu.matmul %1, %0, %cst {dimension_numbers = #tpu.dot_dimension_numbers<[1], [0], [0], [1], [0, 0, 1, 1], [], []>} : vector<8x8xf32>, vector<8x1024xf32>, vector<8x1024xf32> -> vector<8x1024xf32>
    %c0_3 = arith.constant 0 : index
    %c0_4 = arith.constant 0 : index
    %3 = vector.load %arg3[%c0_3, %c0_4] : memref<8x1xf32, #tpu.memory_space<vmem>>, vector<8x1xf32>
    %4 = vector.broadcast %3 : vector<8x1xf32> to vector<8x1024xf32>
    %5 = arith.addf %2, %4 : vector<8x1024xf32>
    %c0_5 = arith.constant 0 : index
    %c0_6 = arith.constant 0 : index
    %6 = vector.load %arg4[%c0_5, %c0_6] : memref<8x1xf32, #tpu.memory_space<vmem>>, vector<8x1xf32>
    %7 = vector.broadcast %6 : vector<8x1xf32> to vector<8x1024xf32>
    %8 = arith.mulf %5, %7 : vector<8x1024xf32>
    %c0_7 = arith.constant 0 : index
    %c0_8 = arith.constant 0 : index
    %9 = vector.load %arg5[%c0_7, %c0_8] : memref<8x1xf32, #tpu.memory_space<vmem>>, vector<8x1xf32>
    %10 = vector.broadcast %9 : vector<8x1xf32> to vector<8x1024xf32>
    %11 = arith.addf %8, %10 : vector<8x1024xf32>
    %cst_9 = arith.constant 0.000000e+00 : f32
    %12 = vector.broadcast %cst_9 : f32 to vector<8x1024xf32>
    %13 = arith.maximumf %11, %12 : vector<8x1024xf32>
    %c0_10 = arith.constant 0 : index
    %c0_11 = arith.constant 0 : index
    %14 = vector.load %arg6[%c0_10, %c0_11] : memref<1x8xf32, #tpu.memory_space<vmem>>, vector<1x8xf32>
    %cst_12 = arith.constant dense<0.000000e+00> : vector<1x1024xf32>
    %15 = tpu.matmul %14, %13, %cst_12 {dimension_numbers = #tpu.dot_dimension_numbers<[1], [0], [0], [1], [0, 0, 1, 1], [], []>} : vector<1x8xf32>, vector<8x1024xf32>, vector<1x1024xf32> -> vector<1x1024xf32>
    %c0_13 = arith.constant 0 : index
    %c0_14 = arith.constant 0 : index
    %16 = vector.load %arg7[%c0_13, %c0_14] : memref<1x1xf32, #tpu.memory_space<vmem>>, vector<1x1xf32>
    %17 = vector.broadcast %16 : vector<1x1xf32> to vector<1x1024xf32>
    %18 = arith.addf %15, %17 : vector<1x1024xf32>
    %c0_15 = arith.constant 0 : index
    %c0_16 = arith.constant 0 : index
    %19 = vector.load %arg8[%c0_15, %c0_16] : memref<1x1024xf32, #tpu.memory_space<vmem>>, vector<1x1024xf32>
    tpu.vector_store %arg8[%c0_15, %c0_16], %18 {strides = array<i32>} : memref<1x1024xf32, #tpu.memory_space<vmem>>, vector<1x1024xf32>,
    return
  }
  func.func @transform_0(%arg0: i32) -> (i32, i32) {
    %c0_i32 = arith.constant 0 : i32
    %c0_i32_0 = arith.constant 0 : i32
    return %c0_i32, %arg0 : i32, i32
  }
  func.func @transform_1(%arg0: i32) -> (i32, i32) {
    %c0_i32 = arith.constant 0 : i32
    %c0_i32_0 = arith.constant 0 : i32
    %c0_i32_1 = arith.constant 0 : i32
    return %c0_i32, %c0_i32_0 : i32, i32
  }
  func.func @transform_2(%arg0: i32) -> (i32, i32) {
    %c0_i32 = arith.constant 0 : i32
    %c0_i32_0 = arith.constant 0 : i32
    %c0_i32_1 = arith.constant 0 : i32
    return %c0_i32, %c0_i32_0 : i32, i32
  }
  func.func @transform_3(%arg0: i32) -> (i32, i32) {
    %c0_i32 = arith.constant 0 : i32
    %c0_i32_0 = arith.constant 0 : i32
    %c0_i32_1 = arith.constant 0 : i32
    return %c0_i32, %c0_i32_0 : i32, i32
  }
  func.func @transform_4(%arg0: i32) -> (i32, i32) {
    %c0_i32 = arith.constant 0 : i32
    %c0_i32_0 = arith.constant 0 : i32
    %c0_i32_1 = arith.constant 0 : i32
    return %c0_i32, %c0_i32_0 : i32, i32
  }
  func.func @transform_5(%arg0: i32) -> (i32, i32) {
    %c0_i32 = arith.constant 0 : i32
    %c0_i32_0 = arith.constant 0 : i32
    %c0_i32_1 = arith.constant 0 : i32
    return %c0_i32, %c0_i32_0 : i32, i32
  }
  func.func @transform_6(%arg0: i32) -> (i32, i32) {
    %c0_i32 = arith.constant 0 : i32
    %c0_i32_0 = arith.constant 0 : i32
    %c0_i32_1 = arith.constant 0 : i32
    return %c0_i32, %c0_i32_0 : i32, i32
  }
  func.func @transform_7(%arg0: i32) -> (i32, i32) {
    %c0_i32 = arith.constant 0 : i32
    %c0_i32_0 = arith.constant 0 : i32
    return %c0_i32, %arg0 : i32, i32
  }
}

</mosaic_0001>

<bundles_post_ra>
// kernel: co_complementation_forward.6
= control target key start
LH: loop header
LB: loop body
LE: loop exit
PB: predicated region body
PF: predicated region fallthrough
CT: control target
= control target key end

     0   :  { %s621_s15 = smov 0   ;;  %s663_s0 = inlined_call_operand.vmem [shape: f32[8,2048], index: 0, kind: input, shape index: {}]   ;;  %s664_s1 = inlined_call_operand.vmem [shape: f32[8,8], index: 1, kind: input, shape index: {}]   ;;  %s665_s2 = inlined_call_operand.vmem [shape: f32[8,1], index: 2, kind: input, shape index: {}]   ;;  %s666_s3 = inlined_call_operand.vmem [shape: f32[8,1], index: 3, kind: output, shape index: {0}]   ;;  %s667_s4 = inlined_call_operand.vmem [shape: f32[8,1], index: 4, kind: output, shape index: {1}]  }
   0x1 LB: > { %s560_s16 = sadd.s32 4294967295, %s591_s15   ;;  %p563_p0 = scmp.ge.s32.totalorder %s591_s15, 1  ;;  %s591_s15 = sphi %s621_s15, %s15_s15  }
   0x2   : > { %p156_p1 = scmp.lt.s32.totalorder %s591_s15, 3 }
   0x4   : > { %p157_p2 = pnand %p563_p0, %p156_p1 }
   0x5   : > { %s564_s17 = sshll.u32 (!%p157_p2), %s560_s16, 3  ;;  %p566_p4 = scmp.ne.s32.totalorder (!%p157_p2), %s560_s16, 0 }
   0x6   : > { %160 = sbr.rel (%p157_p2) target bundleno = 400 (0x190), region = 32  ;;  %p178_p3 = scmp.lt.s32.totalorder (!%p157_p2), %s564_s17, 15 }
   0xd   : > { %s669_s17 = smov (!%p178_p3, %s564_s17), 15  ;;  %186 = sbr.rel (%p566_p4) target bundleno = 20 (0x14), region = 36 }
   0xe   : > { %s565_s18 = sshll.u32 %s669_s17, 3  ;;  %vm187_vm0 = vcmask (!%p566_p4), 7168   ;;  %v593_v0 = vmov (!%p566_p4), 0.0  }
   0xf   : > { %s181_s21 = scalar_lea.vmem %s663_s0, %s565_s18  ;;  %188 = vst.msk [vmem:[%s666_s3] sm:$0xff] (!%p566_p4), %vm187_vm0, %v593_v0  ;;  %189 = vst.msk [vmem:[%s667_s4] sm:$0xff] (!%p566_p4), %vm187_vm0, %v593_v0 }
  0x14 PF: > { %v192_v1 = vld [vmem:[%s181_s21 + $0x8] sm:$0xff]  ;;  %v194_v2 = vld [vmem:[%s181_s21 + $0x18] sm:$0xff]  ;;  %v191_v3 = vld [vmem:[%s181_s21] sm:$0xff]  ;;  %vm205_vm1 = vcmask 64512   ;;  %v594_v6 = vmov 0.0   ;;  %v595_v12 = vmov 0  }
  0x15   : > { %209 = vmatprep.subr.mxu0 %v192_v1  ;;  %280 = vmatprep.subr.mxu1 %v194_v2  ;;  %v193_v4 = vld [vmem:[%s181_s21 + $0x10] sm:$0xff]  ;;  %v190_v5 = vld [vmem:[%s664_s1] sm:$0xff]  ;;  %v196_v7 = vld [vmem:[%s181_s21 + $0x28] sm:$0xff]  ;;  %vm504_vm2 = vcmask 7168  }
  0x16   : > { %210 = vmatpush1.msra.mxu0 %v191_v3  ;;  %273 = vmatprep.mubr.f32.mxu0 %v594_v6  ;;  %v198_v8 = vld [vmem:[%s181_s21 + $0x38] sm:$0xff]  ;;  %v195_v9 = vld [vmem:[%s181_s21 + $0x20] sm:$0xff]  ;;  %v197_v10 = vld [vmem:[%s181_s21 + $0x30] sm:$0xff] }
  0x17   : > { %281 = vmatpush1.msra.mxu1 %v193_v4  ;;  %344 = vmatprep.mubr.f32.mxu1 %v594_v6  ;;  %v199_v11 = vld [vmem:[%s665_s2] sm:$0xff] }
  0x18   : > { %567 = vmatmul.mubr.msk.f32.vlgmr.msra.gmra.mrb[0].mxu0 %vm205_vm1, %v190_v5  ;;  %568 = vmatmul.mubr.msk.f32.vlgmr.msra.gmra.mrb[0].mxu1 %vm205_vm1, %v190_v5  ;;  %v493_v52 = vld [vmem:[%s666_s3] sm:$0xff] }
  0x19   : > { %351 = vmatprep.subr.mxu0 %v196_v7  ;;  %422 = vmatprep.subr.mxu1 %v198_v8  ;;  %v506_v54 = vld [vmem:[%s667_s4] sm:$0xff] }
  0x1a   : > { %352 = vmatpush1.msra.mxu0 %v195_v9  ;;  %415 = vmatprep.mubr.f32.mxu0 %v594_v6 }
  0x1b   : > { %423 = vmatpush1.msra.mxu1 %v197_v10  ;;  %486 = vmatprep.mubr.f32.mxu1 %v594_v6 }
  0x1c   : > { %569 = vmatmul.mubr.msk.f32.vlgmr.msra.gmra.mrb[2].mxu0 %vm205_vm1, %v190_v5  ;;  %570 = vmatmul.mubr.msk.f32.vlgmr.msra.gmra.mrb[2].mxu1 %vm205_vm1, %v190_v5 }
  0x1d   : > { %584 = vset.pattern.permute.xlu0 %v595_v12 }
  0x1e   : > { %202 = vperm.xlu0 %584, %v199_v11  }
  0x9d   : > { %v203_v13 = vpop.permute.xlu0 %202 }
  0xeb   : > { %v275_v14 = vpop.f32.mrb[0].mxu0  ;;  %v346_v15 = vpop.f32.mrb[0].mxu1 }
  0xec   : > { %v276_v16 = vadd.f32 %v275_v14, %v203_v13  ;;  %v277_v17 = vpop.f32.mrb[1].mxu0  ;;  %v348_v18 = vpop.f32.mrb[1].mxu1  ;;  %v347_v19 = vadd.f32 %v346_v15, %v203_v13 }
  0xed   : > { %v278_v20 = vadd.f32 %v277_v17, %v203_v13  ;;  %v349_v24 = vadd.f32 %v348_v18, %v203_v13 }
  0xee   : > { %v507_v21 = vmul.f32 %v276_v16, %v276_v16  ;;  %v509_v29 = vmul.f32 %v347_v19, %v347_v19 }
  0xef   : > { %v494_v22 = vadd.f32 %v278_v20, %v276_v16  ;;  %v508_v23 = vmul.f32 %v278_v20, %v278_v20  ;;  %v417_v25 = vpop.f32.mrb[2].mxu0  ;;  %v488_v26 = vpop.f32.mrb[2].mxu1  ;;  %v510_v34 = vmul.f32 %v349_v24, %v349_v24 }
  0xf0   : > { %v419_v27 = vpop.f32.mrb[3].mxu0  ;;  %v490_v28 = vpop.f32.mrb[3].mxu1  ;;  %v418_v32 = vadd.f32 %v417_v25, %v203_v13  ;;  %v489_v40 = vadd.f32 %v488_v26, %v203_v13 }
  0xf1   : > { %v515_v30 = vadd.f32 %v508_v23, %v507_v21  ;;  %v495_v31 = vadd.f32 %v494_v22, %v347_v19  ;;  %v420_v36 = vadd.f32 %v419_v27, %v203_v13  ;;  %v491_v44 = vadd.f32 %v490_v28, %v203_v13 }
  0xf2   : > { %v511_v39 = vmul.f32 %v418_v32, %v418_v32  ;;  %v513_v45 = vmul.f32 %v489_v40, %v489_v40 }
  0xf3   : > { %v496_v33 = vadd.f32 %v495_v31, %v349_v24  ;;  %v516_v35 = vadd.f32 %v515_v30, %v509_v29  ;;  %v512_v43 = vmul.f32 %v420_v36, %v420_v36  ;;  %v514_v49 = vmul.f32 %v491_v44, %v491_v44 }
  0xf5   : > { %v517_v37 = vadd.f32 %v516_v35, %v510_v34  ;;  %v497_v38 = vadd.f32 %v496_v33, %v418_v32 }
  0xf7   : > { %v518_v41 = vadd.f32 %v517_v37, %v511_v39  ;;  %v498_v42 = vadd.f32 %v497_v38, %v420_v36 }
  0xf9   : > { %v499_v46 = vadd.f32 %v498_v42, %v489_v40  ;;  %v519_v47 = vadd.f32 %v518_v41, %v512_v43 }
  0xfb   : > { %v500_v48 = vadd.f32 %v499_v46, %v491_v44  ;;  %v520_v50 = vadd.f32 %v519_v47, %v513_v45 }
  0xfd   : > { %501 = vadd.xlane.f32.xlu0 %v500_v48  ;;  %v521_v51 = vadd.f32 %v520_v50, %v514_v49 }
  0xff   : > { %522 = vadd.xlane.f32.xlu1 %v521_v51 }
 0x18a   : > { %v502_v53 = vpop.xlane.xlu0 %501 }
 0x18b   : > { %v503_v55 = vadd.f32 %v502_v53, %v493_v52 }
 0x18c   : > { %v523_v56 = vpop.xlane.xlu1 %522 }
 0x18d   : > { %505 = vst.msk [vmem:[%s666_s3] sm:$0xff] %vm504_vm2, %v503_v55  ;;  %v524_v57 = vadd.f32 %v523_v56, %v506_v54 }
 0x18f   : > { %525 = vst.msk [vmem:[%s667_s4] sm:$0xff] %vm504_vm2, %v524_v57 }
 0x190 PF: > { %s15_s15 = sadd.s32 1, %s591_s15  }
 0x191   : > { %p12_p5 = scmp.ge.s32.totalorder %s15_s15, 4  }
 0x193   :  { %14 = sbr.rel (!%p12_p5) target bundleno = 1 (0x1), region = 70 }

// kernel: co_complementation_forward.7
= control target key start
LH: loop header
LB: loop body
LE: loop exit
PB: predicated region body
PF: predicated region fallthrough
CT: control target
= control target key end

     0   :  { %s1068_s24 = smov 0   ;;  %s1158_s0 = inlined_call_operand.vmem [shape: f32[8,2048], index: 0, kind: input, shape index: {}]   ;;  %s1159_s1 = inlined_call_operand.vmem [shape: f32[8,8], index: 1, kind: input, shape index: {}]   ;;  %s1160_s2 = inlined_call_operand.vmem [shape: f32[8,1], index: 2, kind: input, shape index: {}]   ;;  %s1161_s3 = inlined_call_operand.vmem [shape: f32[8,1], index: 3, kind: input, shape index: {}]   ;;  %s1162_s4 = inlined_call_operand.vmem [shape: f32[8,1], index: 4, kind: input, shape index: {}]   ;;  %s1163_s5 = inlined_call_operand.vmem [shape: f32[8,8], index: 5, kind: input, shape index: {}]   ;;  %s1164_s6 = inlined_call_operand.vmem [shape: f32[8,1], index: 6, kind: input, shape index: {}]   ;;  %s1165_s7 = inlined_call_operand.vmem [shape: f32[8,2048], index: 7, kind: output, shape index: {}]  }
   0x1 LB: > { %s987_s25 = sadd.s32 4294967295, %s1024_s24   ;;  %p991_p0 = scmp.ge.s32.totalorder %s1024_s24, 1  ;;  %s1024_s24 = sphi %s1068_s24, %s17_s24  }
   0x2   : > { %p238_p1 = scmp.lt.s32.totalorder %s1024_s24, 3 }
   0x4   : > { %p239_p2 = pnand %p991_p0, %p238_p1 }
   0x5   : > { %s992_s26 = sshll.u32 (!%p239_p2), %s987_s25, 3  ;;  %v291_v0 = vld [vmem:[%s1160_s2] sm:$0xff] (!%p239_p2)  ;;  %v1026_v1 = vmov (!%p239_p2), 0.0   ;;  %v1027_v3 = vmov (!%p239_p2), 0   ;;  %vm297_vm0 = vcmask (!%p239_p2), 64512  }
   0x6   : > { %242 = sbr.rel (%p239_p2) target bundleno = 464 (0x1d0), region = 48  ;;  %p271_p3 = scmp.lt.s32.totalorder (!%p239_p2), %s992_s26, 15  ;;  %365 = vmatprep.mubr.f32.mxu0 (!%p239_p2), %v1026_v1  ;;  %436 = vmatprep.mubr.f32.mxu1 (!%p239_p2), %v1026_v1  ;;  %v599_v2 = vld [vmem:[%s1162_s4] sm:$0xff] (!%p239_p2) }
   0x7   : > { %1016 = vset.pattern.permute.xlu0 (!%p239_p2), %v1027_v3  ;;  %1017 = vset.pattern.permute.xlu1 (!%p239_p2), %v1027_v3  ;;  %v585_v4 = vld [vmem:[%s1161_s3] sm:$0xff] (!%p239_p2) }
   0x8   : > { %294 = vperm.xlu0 (!%p239_p2), %1016, %v291_v0   ;;  %602 = vperm.xlu1 (!%p239_p2), %1017, %v599_v2   ;;  %v622_v5 = vld [vmem:[%s1164_s6] sm:$0xff] (!%p239_p2) }
   0x9   : > { %v290_v6 = vld [vmem:[%s1159_s1] sm:$0xff] (!%p239_p2) }
   0xa   : > { %v621_v52 = vld [vmem:[%s1163_s5] sm:$0xff] (!%p239_p2) }
   0xc   : > { %588 = vperm.xlu0 (!%p239_p2), %1016, %v585_v4   ;;  %625 = vperm.xlu1 (!%p239_p2), %1017, %v622_v5  }
   0xd   : > { %s1167_s26 = smov (!%p271_p3, %s992_s26), 15 }
   0xe   : > { %s993_s12 = sshll.u32 %s1167_s26, 3 }
   0xf   : > { %s274_s15 = scalar_lea.vmem %s1158_s0, %s993_s12  ;;  %s280_s22 = scalar_lea.vmem %s1165_s7, %s993_s12 }
  0x10   : > { %v1101_v7 = vld [vmem:[%s274_s15 + $0x8] sm:$0xff]  ;;  %v1103_v8 = vld [vmem:[%s274_s15 + $0x18] sm:$0xff]  ;;  %v1105_v9 = vld [vmem:[%s274_s15] sm:$0xff] }
  0x11   : > { %301 = vmatprep.subr.mxu0 %v1101_v7  ;;  %372 = vmatprep.subr.mxu1 %v1103_v8  ;;  %v1109_v10 = vld [vmem:[%s274_s15 + $0x10] sm:$0xff]  ;;  %v1111_v11 = vld [vmem:[%s274_s15 + $0x28] sm:$0xff]  ;;  %v1113_v12 = vld [vmem:[%s274_s15 + $0x38] sm:$0xff] }
  0x12   : > { %302 = vmatpush1.msra.mxu0 %v1105_v9  ;;  %373 = vmatpush1.msra.mxu1 %v1109_v10  ;;  %v1117_v13 = vld [vmem:[%s274_s15 + $0x20] sm:$0xff]  ;;  %v1121_v14 = vld [vmem:[%s274_s15 + $0x30] sm:$0xff] }
  0x13   : > { %996 = vmatmul.mubr.msk.f32.vlgmr.msra.gmra.mrb[0].mxu0 %vm297_vm0, %v290_v6  ;;  %997 = vmatmul.mubr.msk.f32.vlgmr.msra.gmra.mrb[0].mxu1 %vm297_vm0, %v290_v6 }
  0x14   : > { %443 = vmatprep.subr.mxu0 %v1111_v11  ;;  %514 = vmatprep.subr.mxu1 %v1113_v12 }
  0x15   : > { %444 = vmatpush1.msra.mxu0 %v1117_v13  ;;  %507 = vmatprep.mubr.f32.mxu0 %v1026_v1 }
  0x16   : > { %515 = vmatpush1.msra.mxu1 %v1121_v14  ;;  %578 = vmatprep.mubr.f32.mxu1 %v1026_v1 }
  0x17   : > { %998 = vmatmul.mubr.msk.f32.vlgmr.msra.gmra.mrb[2].mxu0 %vm297_vm0, %v290_v6  ;;  %999 = vmatmul.mubr.msk.f32.vlgmr.msra.gmra.mrb[2].mxu1 %vm297_vm0, %v290_v6 }
  0x18   : > { %695 = vmatprep.mubr.f32.mxu0 %v1026_v1  ;;  %766 = vmatprep.mubr.f32.mxu1 %v1026_v1 }
  0x87   : > { %v295_v15 = vpop.permute.xlu0 %294  ;;  %v603_v27 = vpop.permute.xlu1 %602 }
  0x8b   : > { %v589_v22 = vpop.permute.xlu0 %588  ;;  %v626_v59 = vpop.permute.xlu1 %625 }
  0xe6   : > { %v367_v16 = vpop.f32.mrb[0].mxu0  ;;  %v438_v17 = vpop.f32.mrb[0].mxu1 }
  0xe7   : > { %v368_v18 = vadd.f32 %v367_v16, %v295_v15  ;;  %v439_v19 = vadd.f32 %v438_v17, %v295_v15  ;;  %v369_v20 = vpop.f32.mrb[1].mxu0  ;;  %v440_v21 = vpop.f32.mrb[1].mxu1 }
  0xe8   : > { %v370_v23 = vadd.f32 %v369_v20, %v295_v15  ;;  %v441_v24 = vadd.f32 %v440_v21, %v295_v15 }
  0xe9   : > { %v591_v25 = vmul.f32 %v589_v22, %v368_v18  ;;  %v593_v26 = vmul.f32 %v589_v22, %v439_v19 }
  0xea   : > { %v592_v28 = vmul.f32 %v589_v22, %v370_v23  ;;  %v594_v29 = vmul.f32 %v589_v22, %v441_v24  ;;  %v509_v30 = vpop.f32.mrb[2].mxu0  ;;  %v580_v31 = vpop.f32.mrb[2].mxu1 }
  0xeb   : > { %v510_v32 = vadd.f32 %v509_v30, %v295_v15  ;;  %v581_v33 = vadd.f32 %v580_v31, %v295_v15  ;;  %v511_v34 = vpop.f32.mrb[3].mxu0  ;;  %v582_v35 = vpop.f32.mrb[3].mxu1  ;;  %v605_v36 = vadd.f32 %v603_v27, %v591_v25  ;;  %v607_v37 = vadd.f32 %v603_v27, %v593_v26 }
  0xec   : > { %v512_v38 = vadd.f32 %v511_v34, %v295_v15  ;;  %v583_v39 = vadd.f32 %v582_v35, %v295_v15  ;;  %v606_v40 = vadd.f32 %v603_v27, %v592_v28  ;;  %v608_v41 = vadd.f32 %v603_v27, %v594_v29 }
  0xed   : > { %v595_v42 = vmul.f32 %v589_v22, %v510_v32  ;;  %v597_v43 = vmul.f32 %v589_v22, %v581_v33  ;;  %v613_v50 = vmax.f32 %v605_v36, 0.0  ;;  %v615_v51 = vmax.f32 %v607_v37, 0.0 }
  0xee   : > { %v596_v44 = vmul.f32 %v589_v22, %v512_v38  ;;  %v598_v45 = vmul.f32 %v589_v22, %v583_v39  ;;  %v614_v46 = vmax.f32 %v606_v40, 0.0  ;;  %v616_v47 = vmax.f32 %v608_v41, 0.0 }
  0xef   : > { %v609_v48 = vadd.f32 %v603_v27, %v595_v42  ;;  %v611_v49 = vadd.f32 %v603_v27, %v597_v43 }
  0xf0   : > { %631 = vmatprep.subr.mxu0 %v614_v46  ;;  %702 = vmatprep.subr.mxu1 %v616_v47  ;;  %v610_v53 = vadd.f32 %v603_v27, %v596_v44  ;;  %v612_v54 = vadd.f32 %v603_v27, %v598_v45 }
  0xf1   : > { %632 = vmatpush1.msra.mxu0 %v613_v50  ;;  %703 = vmatpush1.msra.mxu1 %v615_v51  ;;  %v617_v57 = vmax.f32 %v609_v48, 0.0  ;;  %v619_v58 = vmax.f32 %v611_v49, 0.0 }
  0xf2   : > { %1000 = vmatmul.mubr.msk.f32.vlgmr.msra.gmra.mrb[4].mxu0 %vm297_vm0, %v621_v52  ;;  %1001 = vmatmul.mubr.msk.f32.vlgmr.msra.gmra.mrb[4].mxu1 %vm297_vm0, %v621_v52  ;;  %v618_v55 = vmax.f32 %v610_v53, 0.0  ;;  %v620_v56 = vmax.f32 %v612_v54, 0.0 }
  0xf3   : > { %837 = vmatprep.mubr.f32.mxu0 %v1026_v1  ;;  %908 = vmatprep.mubr.f32.mxu1 %v1026_v1 }
  0xf4   : > { %773 = vmatprep.subr.mxu0 %v618_v55  ;;  %844 = vmatprep.subr.mxu1 %v620_v56 }
  0xf5   : > { %774 = vmatpush1.msra.mxu0 %v617_v57  ;;  %845 = vmatpush1.msra.mxu1 %v619_v58 }
  0xf6   : > { %1002 = vmatmul.mubr.msk.f32.vlgmr.msra.gmra.mrb[6].mxu0 %vm297_vm0, %v621_v52  ;;  %1003 = vmatmul.mubr.msk.f32.vlgmr.msra.gmra.mrb[6].mxu1 %vm297_vm0, %v621_v52 }
 0x1c5   : > { %v697_v60 = vpop.f32.mrb[4].mxu0  ;;  %v768_v61 = vpop.f32.mrb[4].mxu1 }
 0x1c6   : > { %v698_v62 = vadd.f32 %v697_v60, %v626_v59  ;;  %v769_v63 = vadd.f32 %v768_v61, %v626_v59  ;;  %v699_v0 = vpop.f32.mrb[5].mxu0  ;;  %v770_v2 = vpop.f32.mrb[5].mxu1 }
 0x1c7   : > { %v700_v1 = vadd.f32 %v699_v0, %v626_v59  ;;  %v771_v3 = vadd.f32 %v770_v2, %v626_v59 }
 0x1c8   : > { %v915_v4 = vadd.f32 %v698_v62, %v1105_v9  ;;  %v917_v5 = vadd.f32 %v769_v63, %v1109_v10 }
 0x1c9   : > { %v916_v6 = vadd.f32 %v700_v1, %v1101_v7  ;;  %v918_v15 = vadd.f32 %v771_v3, %v1103_v8  ;;  %v839_v16 = vpop.f32.mrb[6].mxu0  ;;  %v910_v17 = vpop.f32.mrb[6].mxu1 }
 0x1ca   : > { %923 = vst [vmem:[%s280_s22] sm:$0xff] %v915_v4  ;;  %925 = vst [vmem:[%s280_s22 + $0x10] sm:$0xff] %v917_v5  ;;  %v840_v18 = vadd.f32 %v839_v16, %v626_v59  ;;  %v911_v19 = vadd.f32 %v910_v17, %v626_v59  ;;  %v841_v20 = vpop.f32.mrb[7].mxu0  ;;  %v912_v21 = vpop.f32.mrb[7].mxu1 }
 0x1cb   : > { %924 = vst [vmem:[%s280_s22 + $0x8] sm:$0xff] %v916_v6  ;;  %926 = vst [vmem:[%s280_s22 + $0x18] sm:$0xff] %v918_v15  ;;  %v842_v22 = vadd.f32 %v841_v20, %v626_v59  ;;  %v913_v23 = vadd.f32 %v912_v21, %v626_v59 }
 0x1cc   : > { %v919_v9 = vadd.f32 %v840_v18, %v1117_v13  ;;  %v921_v10 = vadd.f32 %v911_v19, %v1121_v14 }
 0x1cd   : > { %v920_v7 = vadd.f32 %v842_v22, %v1111_v11  ;;  %v922_v8 = vadd.f32 %v913_v23, %v1113_v12 }
 0x1ce   : > { %927 = vst [vmem:[%s280_s22 + $0x20] sm:$0xff] %v919_v9  ;;  %929 = vst [vmem:[%s280_s22 + $0x30] sm:$0xff] %v921_v10 }
 0x1cf   : > { %928 = vst [vmem:[%s280_s22 + $0x28] sm:$0xff] %v920_v7  ;;  %930 = vst [vmem:[%s280_s22 + $0x38] sm:$0xff] %v922_v8 }
 0x1d0 PF: > { %s17_s24 = sadd.s32 1, %s1024_s24  }
 0x1d1   : > { %p14_p4 = scmp.ge.s32.totalorder %s17_s24, 4  }
 0x1d3   :  { %16 = sbr.rel (!%p14_p4) target bundleno = 1 (0x1), region = 78 }

// kernel: co_complementation_forward.11
= control target key start
LH: loop header
LB: loop body
LE: loop exit
PB: predicated region body
PF: predicated region fallthrough
CT: control target
= control target key end

     0   :  { %s1113_s26 = smov 0   ;;  %s1165_s0 = inlined_call_operand.vmem [shape: f32[8,2048], index: 0, kind: input, shape index: {}]   ;;  %s1166_s1 = inlined_call_operand.vmem [shape: f32[8,8], index: 1, kind: input, shape index: {}]   ;;  %s1167_s2 = inlined_call_operand.vmem [shape: f32[8,1], index: 2, kind: input, shape index: {}]   ;;  %s1168_s3 = inlined_call_operand.vmem [shape: f32[8,1], index: 3, kind: input, shape index: {}]   ;;  %s1169_s4 = inlined_call_operand.vmem [shape: f32[8,1], index: 4, kind: input, shape index: {}]   ;;  %s1170_s5 = inlined_call_operand.vmem [shape: f32[1,8], index: 5, kind: input, shape index: {}]   ;;  %s1171_s6 = inlined_call_operand.<no memory space> [shape: f32[1,1], index: 6, kind: input, shape index: {}]   ;;  %s1172_s7 = inlined_call_operand.vmem [shape: f32[1,2048], index: 7, kind: output, shape index: {}]  }
   0x1   :  { %v12_v0 = vstv %s1171_s6 }
   0x2   :  { %13 = vst [vmem:[#allocation2] sm:$0x1] %v12_v0 }
   0x3 LB: > { %s1028_s27 = sadd.s32 4294967295, %s1065_s26   ;;  %p1032_p0 = scmp.ge.s32.totalorder %s1065_s26, 1  ;;  %s1065_s26 = sphi %s1113_s26, %s19_s26  }
   0x4   : > { %p240_p1 = scmp.lt.s32.totalorder %s1065_s26, 3 }
   0x6   : > { %p241_p2 = pnand %p1032_p0, %p240_p1 }
   0x7   : > { %s1033_s28 = sshll.u32 (!%p241_p2), %s1028_s27, 3  ;;  %v291_v1 = vld [vmem:[%s1167_s2] sm:$0xff] (!%p241_p2)  ;;  %v1067_v2 = vmov (!%p241_p2), 0.0   ;;  %v1068_v4 = vmov (!%p241_p2), 0   ;;  %vm297_vm0 = vcmask (!%p241_p2), 64512   ;;  %v628_v60 = vlaneseq (!%p241_p2) }
   0x8   : > { %244 = sbr.rel (%p241_p2) target bundleno = 474 (0x1da), region = 48  ;;  %p272_p3 = scmp.lt.s32.totalorder (!%p241_p2), %s1033_s28, 15  ;;  %365 = vmatprep.mubr.f32.mxu0 (!%p241_p2), %v1067_v2  ;;  %436 = vmatprep.mubr.f32.mxu1 (!%p241_p2), %v1067_v2  ;;  %v599_v3 = vld [vmem:[%s1169_s4] sm:$0xff] (!%p241_p2)  ;;  %v1069_v62 = vmov (!%p241_p2), 1966171168  }
   0x9   : > { %1057 = vset.pattern.permute.xlu0 (!%p241_p2), %v1068_v4  ;;  %1058 = vset.pattern.permute.xlu1 (!%p241_p2), %v1068_v4  ;;  %v585_v5 = vld [vmem:[%s1168_s3] sm:$0xff] (!%p241_p2)  ;;  %v629_v61 = vshrl.u32 (!%p241_p2), %v628_v60, 7  ;;  %v932_v63 = vunpack.c.l.s4 (!%p241_p2), %v1069_v62 }
   0xa   : > { %294 = vperm.xlu0 (!%p241_p2), %1057, %v291_v1   ;;  %602 = vperm.xlu1 (!%p241_p2), %1058, %v599_v3   ;;  %v622_v6 = vld [vmem:[#allocation2] sm:$0x1] (!%p241_p2) }
   0xb   : > { %v290_v7 = vld [vmem:[%s1166_s1] sm:$0xff] (!%p241_p2)  ;;  %v630_v0 = vsub.s32 (!%p241_p2), 0, %v629_v61  ;;  %v933_v3 = vunpack.c.0.s8 (!%p241_p2), %v932_v63 }
   0xc   : > { %v621_v53 = vld [vmem:[%s1170_s5] sm:$0x1] (!%p241_p2) }
   0xe   : > { %588 = vperm.xlu0 (!%p241_p2), %1057, %v585_v5   ;;  %625 = vperm.xlu1 (!%p241_p2), %1058, %v622_v6  }
   0xf   : > { %s1174_s28 = smov (!%p272_p3, %s1033_s28), 15 }
  0x10   : > { %s1034_s11 = sshll.u32 %s1174_s28, 3  ;;  %s280_s21 = scalar_lea.vmem %s1172_s7, %s1174_s28 }
  0x11   : > { %s275_s14 = scalar_lea.vmem %s1165_s0, %s1034_s11 }
  0x12   : > { %v283_v8 = vld [vmem:[%s275_s14 + $0x8] sm:$0xff]  ;;  %v285_v9 = vld [vmem:[%s275_s14 + $0x18] sm:$0xff]  ;;  %v282_v10 = vld [vmem:[%s275_s14] sm:$0xff] }
  0x13   : > { %301 = vmatprep.subr.mxu0 %v283_v8  ;;  %372 = vmatprep.subr.mxu1 %v285_v9  ;;  %v284_v11 = vld [vmem:[%s275_s14 + $0x10] sm:$0xff]  ;;  %v287_v12 = vld [vmem:[%s275_s14 + $0x28] sm:$0xff]  ;;  %v289_v13 = vld [vmem:[%s275_s14 + $0x38] sm:$0xff] }
  0x14   : > { %302 = vmatpush1.msra.mxu0 %v282_v10  ;;  %373 = vmatpush1.msra.mxu1 %v284_v11  ;;  %v286_v14 = vld [vmem:[%s275_s14 + $0x20] sm:$0xff]  ;;  %v288_v15 = vld [vmem:[%s275_s14 + $0x30] sm:$0xff]  ;;  %v936_v10 = vsub.s32 %v933_v3, %v629_v61 }
  0x15   : > { %1036 = vmatmul.mubr.msk.f32.vlgmr.msra.gmra.mrb[0].mxu0 %vm297_vm0, %v290_v7  ;;  %1037 = vmatmul.mubr.msk.f32.vlgmr.msra.gmra.mrb[0].mxu1 %vm297_vm0, %v290_v7 }
  0x16   : > { %443 = vmatprep.subr.mxu0 %v287_v12  ;;  %514 = vmatprep.subr.mxu1 %v289_v13 }
  0x17   : > { %444 = vmatpush1.msra.mxu0 %v286_v14  ;;  %507 = vmatprep.mubr.f32.mxu0 %v1067_v2 }
  0x18   : > { %515 = vmatpush1.msra.mxu1 %v288_v15  ;;  %578 = vmatprep.mubr.f32.mxu1 %v1067_v2 }
  0x19   : > { %1038 = vmatmul.mubr.msk.f32.vlgmr.msra.gmra.mrb[2].mxu0 %vm297_vm0, %v290_v7  ;;  %1039 = vmatmul.mubr.msk.f32.vlgmr.msra.gmra.mrb[2].mxu1 %vm297_vm0, %v290_v7 }
  0x1a   : > { %699 = vmatprep.mubr.f32.mxu0 %v1067_v2  ;;  %770 = vmatprep.mubr.f32.mxu1 %v1067_v2 }
  0x89   : > { %v295_v16 = vpop.permute.xlu0 %294  ;;  %v603_v28 = vpop.permute.xlu1 %602 }
  0x8d   : > { %v589_v23 = vpop.permute.xlu0 %588  ;;  %v626_v1 = vpop.permute.xlu1 %625 }
  0x8e   : > { %v631_v4 = vrot.slane %v626_v1, %v630_v0 }
  0xe8   : > { %v367_v17 = vpop.f32.mrb[0].mxu0  ;;  %v438_v18 = vpop.f32.mrb[0].mxu1 }
  0xe9   : > { %v368_v19 = vadd.f32 %v367_v17, %v295_v16  ;;  %v439_v20 = vadd.f32 %v438_v18, %v295_v16  ;;  %v369_v21 = vpop.f32.mrb[1].mxu0  ;;  %v440_v22 = vpop.f32.mrb[1].mxu1 }
  0xea   : > { %v370_v24 = vadd.f32 %v369_v21, %v295_v16  ;;  %v441_v25 = vadd.f32 %v440_v22, %v295_v16 }
  0xeb   : > { %v591_v26 = vmul.f32 %v589_v23, %v368_v19  ;;  %v593_v27 = vmul.f32 %v589_v23, %v439_v20 }
  0xec   : > { %v592_v29 = vmul.f32 %v589_v23, %v370_v24  ;;  %v594_v30 = vmul.f32 %v589_v23, %v441_v25  ;;  %v509_v31 = vpop.f32.mrb[2].mxu0  ;;  %v580_v32 = vpop.f32.mrb[2].mxu1 }
  0xed   : > { %v510_v33 = vadd.f32 %v509_v31, %v295_v16  ;;  %v581_v34 = vadd.f32 %v580_v32, %v295_v16  ;;  %v511_v35 = vpop.f32.mrb[3].mxu0  ;;  %v582_v36 = vpop.f32.mrb[3].mxu1  ;;  %v605_v37 = vadd.f32 %v603_v28, %v591_v26  ;;  %v607_v38 = vadd.f32 %v603_v28, %v593_v27 }
  0xee   : > { %v512_v39 = vadd.f32 %v511_v35, %v295_v16  ;;  %v583_v40 = vadd.f32 %v582_v36, %v295_v16  ;;  %v606_v41 = vadd.f32 %v603_v28, %v592_v29  ;;  %v608_v42 = vadd.f32 %v603_v28, %v594_v30 }
  0xef   : > { %v595_v43 = vmul.f32 %v589_v23, %v510_v33  ;;  %v597_v44 = vmul.f32 %v589_v23, %v581_v34  ;;  %v613_v51 = vmax.f32 %v605_v37, 0.0  ;;  %v615_v52 = vmax.f32 %v607_v38, 0.0 }
  0xf0   : > { %v596_v45 = vmul.f32 %v589_v23, %v512_v39  ;;  %v598_v46 = vmul.f32 %v589_v23, %v583_v40  ;;  %v614_v47 = vmax.f32 %v606_v41, 0.0  ;;  %v616_v48 = vmax.f32 %v608_v42, 0.0 }
  0xf1   : > { %v609_v49 = vadd.f32 %v603_v28, %v595_v43  ;;  %v611_v50 = vadd.f32 %v603_v28, %v597_v44 }
  0xf2   : > { %635 = vmatprep.subr.mxu0 %v614_v47  ;;  %706 = vmatprep.subr.mxu1 %v616_v48  ;;  %v610_v54 = vadd.f32 %v603_v28, %v596_v45  ;;  %v612_v55 = vadd.f32 %v603_v28, %v598_v46 }
  0xf3   : > { %636 = vmatpush1.msra.mxu0 %v613_v51  ;;  %707 = vmatpush1.msra.mxu1 %v615_v52  ;;  %v617_v58 = vmax.f32 %v609_v49, 0.0  ;;  %v619_v59 = vmax.f32 %v611_v50, 0.0 }
  0xf4   : > { %1040 = vmatmul.mubr.msk.f32.vlgmr.msra.gmra.mrb[4].mxu0 %vm297_vm0, %v621_v53  ;;  %1041 = vmatmul.mubr.msk.f32.vlgmr.msra.gmra.mrb[4].mxu1 %vm297_vm0, %v621_v53  ;;  %v618_v56 = vmax.f32 %v610_v54, 0.0  ;;  %v620_v57 = vmax.f32 %v612_v55, 0.0 }
  0xf5   : > { %841 = vmatprep.mubr.f32.mxu0 %v1067_v2  ;;  %912 = vmatprep.mubr.f32.mxu1 %v1067_v2 }
  0xf6   : > { %777 = vmatprep.subr.mxu0 %v618_v56  ;;  %848 = vmatprep.subr.mxu1 %v620_v57 }
  0xf7   : > { %778 = vmatpush1.msra.mxu0 %v617_v58  ;;  %849 = vmatpush1.msra.mxu1 %v619_v59 }
  0xf8   : > { %1042 = vmatmul.mubr.msk.f32.vlgmr.msra.gmra.mrb[6].mxu0 %vm297_vm0, %v621_v53  ;;  %1043 = vmatmul.mubr.msk.f32.vlgmr.msra.gmra.mrb[6].mxu1 %vm297_vm0, %v621_v53 }
 0x1c7   : > { %v701_v5 = vpop.f32.mrb[4].mxu0  ;;  %v772_v6 = vpop.f32.mrb[4].mxu1 }
 0x1c8   : > { %v702_v7 = vadd.f32 %v701_v5, %v631_v4  ;;  %v773_v2 = vadd.f32 %v772_v6, %v631_v4  ;;  %v703_v8 = vpop.f32.mrb[5].mxu0  ;;  %v774_v9 = vpop.f32.mrb[5].mxu1 }
 0x1c9   : > { %v704_v11 = vadd.f32 %v703_v8, %v631_v4  ;;  %v775_v12 = vadd.f32 %v774_v9, %v631_v4 }
 0x1cb   : > { %v927_v13 = vcombine.low %v702_v7, %v704_v11  ;;  %v928_v14 = vcombine.low %v773_v2, %v775_v12  ;;  %v843_v15 = vpop.f32.mrb[6].mxu0  ;;  %v914_v16 = vpop.f32.mrb[6].mxu1 }
 0x1cc   : > { %v844_v17 = vadd.f32 %v843_v15, %v631_v4  ;;  %v915_v18 = vadd.f32 %v914_v16, %v631_v4  ;;  %v845_v19 = vpop.f32.mrb[7].mxu0  ;;  %v916_v20 = vpop.f32.mrb[7].mxu1 }
 0x1cd   : > { %v937_v21 = vrot.slane %v927_v13, %v936_v10  ;;  %v944_v22 = vrot.slane %v928_v14, %v936_v10  ;;  %v846_v23 = vadd.f32 %v845_v19, %v631_v4  ;;  %v917_v24 = vadd.f32 %v916_v20, %v631_v4 }
 0x1cf   : > { %v959_v25 = vcombine.low %v937_v21, %v944_v22  ;;  %v929_v26 = vcombine.low %v844_v17, %v846_v23  ;;  %v930_v27 = vcombine.low %v915_v18, %v917_v24 }
 0x1d1   : > { %v951_v28 = vrot.slane %v929_v26, %v936_v10  ;;  %v958_v29 = vrot.slane %v930_v27, %v936_v10  ;;  %v967_v31 = vrot.slane %v959_v25, %v936_v10 }
 0x1d3   : > { %v960_v30 = vcombine.low %v951_v28, %v958_v29 }
 0x1d5   : > { %v974_v32 = vrot.slane %v960_v30, %v936_v10 }
 0x1d7   : > { %v975_v33 = vcombine.low %v967_v31, %v974_v32 }
 0x1d9   : > { %977 = vst [vmem:[%s280_s21] sm:$0xff] %v975_v33 }
 0x1da PF: > { %s19_s26 = sadd.s32 1, %s1065_s26  }
 0x1db   : > { %p16_p4 = scmp.ge.s32.totalorder %s19_s26, 4  }
 0x1dd   :  { %18 = sbr.rel (!%p16_p4) target bundleno = 3 (0x3), region = 78 }

</bundles_post_ra>
